<compile_context>
chip_gen: v5e
topology: v5e:2x2
jax: 0.10.0
libtpu: 0.0.40
codegen_flags: <defaults>
</compile_context>

<pallas_src>
import jax
import jax.numpy as jnp
from jax.experimental import pallas as pl
from jax.experimental.pallas import tpu as pltpu

NEG_SLOPE = 0.2  # nn.LeakyReLU(0.2)


def _leaky_relu(x):
    # Pure VPU: compare + select.
    return jnp.where(x > 0, x, NEG_SLOPE * x)


def _mlp_kernel(x_ref, w1_ref, b1_ref, w2_ref, b2_ref, w3_ref, b3_ref,
                w4_ref, b4_ref, o_ref):
    """One batch tile per grid step; all four layers fused on-chip."""
    x = x_ref[...]                                                # (tb, nin)
    # f32 inputs -> force the full-precision MXU algorithm so we match the
    # exact nn.Linear forward; bf16 inputs -> native single-pass MXU.
    prec = (jax.lax.Precision.HIGHEST
            if x_ref.dtype == jnp.float32 else None)

    h = jnp.dot(x, w1_ref[...], precision=prec,
                preferred_element_type=jnp.float32) + b1_ref[...]
    h = _leaky_relu(h).astype(w2_ref.dtype)
    h = jnp.dot(h, w2_ref[...], precision=prec,
                preferred_element_type=jnp.float32) + b2_ref[...]
    h = _leaky_relu(h).astype(w3_ref.dtype)
    h = jnp.dot(h, w3_ref[...], precision=prec,
                preferred_element_type=jnp.float32) + b3_ref[...]
    h = _leaky_relu(h).astype(w4_ref.dtype)
    y = jnp.dot(h, w4_ref[...], precision=prec,
                preferred_element_type=jnp.float32) + b4_ref[...]

    o_ref[...] = y.astype(o_ref.dtype)


def _pick_block_b(B, max_tile):
    # B <= 16: one full-extent block (sub-8-row tiles are layout-illegal and
    # pointless).  Otherwise: ~half the batch rounded up to a multiple of 8 and
    # capped at max_tile, so the grid has >= 2 "parallel" steps (v7x dual
    # TensorCore) while the per-step fixed cost is amortized over a big tile.
    if B <= 16:
        return B
    half = -(-B // 2)
    half = ((half + 7) // 8) * 8
    return min(max_tile, half)


def _vmem_limit_bytes(block_b, nin, nh, nout, act_itemsize, out_itemsize):
    # Double-buffered x / out tiles + f32 intermediates the compiler has to
    # materialize + (conservatively double-counted) resident weights/biases.
    x_bytes = 2 * block_b * nin * act_itemsize
    o_bytes = 2 * block_b * nout * out_itemsize
    scratch = 3 * block_b * nh * 4
    w_bytes = 2 * (nin * nh + 2 * nh * nh + nh * nout) * act_itemsize
    b_bytes = 2 * (3 * nh + nout) * 4
    need = x_bytes + o_bytes + scratch + w_bytes + b_bytes
    # 2x headroom + 4 MiB; floor 32 MiB (v5e scoped default is only 16 MiB),
    # cap 48 MiB (v7x has 64 MiB physical VMEM per TensorCore).
    return int(min(max(2 * need + (4 << 20), 32 << 20), 48 << 20))


def _build_call(B, nin, nh, nout, block_b, out_dtype,
                single_buffer_weights, vmem_limit):
    grid = (pl.cdiv(B, block_b),)

    def resident(shape):
        # Full-array block, constant index => stays in VMEM across all grid
        # steps (never re-DMA'd).  Buffered(1) drops the pointless second
        # buffer and halves resident-weight VMEM.
        if single_buffer_weights:
            return pl.BlockSpec(shape, lambda i: (0, 0),
                                pipeline_mode=pl.Buffered(1))
        return pl.BlockSpec(shape, lambda i: (0, 0))

    return pl.pallas_call(
        _mlp_kernel,
        out_shape=jax.ShapeDtypeStruct((B, nout), out_dtype),
        grid_spec=pltpu.PrefetchScalarGridSpec(
            num_scalar_prefetch=0,
            grid=grid,
            in_specs=[
                pl.BlockSpec((block_b, nin), lambda i: (i, 0)),   # x tile
                resident((nin, nh)), resident((1, nh)),           # L1
                resident((nh, nh)), resident((1, nh)),            # L2
                resident((nh, nh)), resident((1, nh)),            # L3
                resident((nh, nout)), resident((1, nout)),        # L4
            ],
            out_specs=pl.BlockSpec((block_b, nout), lambda i: (i, 0)),
        ),
        compiler_params=pltpu.CompilerParams(
            dimension_semantics=("parallel",),
            vmem_limit_bytes=vmem_limit,
        ),
    )


def mlp_forward(x, params, *, block_b=None, compute_dtype=jnp.bfloat16,
                max_tile=4096):
    """x: (B, nin); params: ((w1,b1),...,(w4,b4)) with wi laid out (in, out).

    compute_dtype=jnp.bfloat16 (default) runs the MXU natively with f32
    accumulation; compute_dtype=jnp.float32 reproduces exact f32 numerics.
    The output dtype always matches x.dtype.
    """
    (w1, b1), (w2, b2), (w3, b3), (w4, b4) = params
    B, nin = x.shape
    nh = w1.shape[1]
    nout = w4.shape[1]
    out_dtype = x.dtype
    if block_b is None:
        block_b = _pick_block_b(B, max_tile)

    xc = x.astype(compute_dtype)
    w1c, w2c, w3c, w4c = (w.astype(compute_dtype) for w in (w1, w2, w3, w4))
    # Biases as f32 (1, N) rows: lane-mapped, broadcast over the batch tile.
    b1r, b2r, b3r, b4r = (b.reshape(1, -1).astype(jnp.float32)
                          for b in (b1, b2, b3, b4))
    args = (xc, w1c, b1r, w2c, b2r, w3c, b3r, w4c, b4r)

    vmem_limit = _vmem_limit_bytes(
        block_b, nin, nh, nout,
        jnp.dtype(compute_dtype).itemsize, jnp.dtype(out_dtype).itemsize)

    try:
        out = _build_call(B, nin, nh, nout, block_b, out_dtype,
                          True, vmem_limit)(*args)
        return jax.block_until_ready(out)   # surface lowering errors here
    except Exception:
        # Fallback if this Pallas build rejects single-buffered block specs.
        return _build_call(B, nin, nh, nout, block_b, out_dtype,
                           False, vmem_limit)(*args)


def mlp_ref(x, params):
    # Pure-JAX reference mirroring the PyTorch forward (full-precision matmuls
    # so the comparison is not polluted by XLA's default TPU matmul precision).
    (w1, b1), (w2, b2), (w3, b3), (w4, b4) = params
    hi = jax.lax.Precision.HIGHEST
    h = jnp.dot(x, w1, precision=hi) + b1
    h = jnp.where(h > 0, h, NEG_SLOPE * h)
    h = jnp.dot(h, w2, precision=hi) + b2
    h = jnp.where(h > 0, h, NEG_SLOPE * h)
    h = jnp.dot(h, w3, precision=hi) + b3
    h = jnp.where(h > 0, h, NEG_SLOPE * h)
    return jnp.dot(h, w4, precision=hi) + b4


def _init_params(key, nin, nh, nout):
    ks = jax.random.split(key, 8)

    def lin(kw, kb, fan_in, fan_out):
        s = 1.0 / jnp.sqrt(fan_in)
        w = jax.random.uniform(kw, (fan_in, fan_out), jnp.float32, -s, s)
        b = jax.random.uniform(kb, (fan_out,), jnp.float32, -s, s)
        return w, b

    return (lin(ks[0], ks[1], nin, nh),
            lin(ks[2], ks[3], nh, nh),
            lin(ks[4], ks[5], nh, nh),
            lin(ks[6], ks[7], nh, nout))


if __name__ == "__main__":
    key = jax.random.PRNGKey(0)
    kx, kx2, kp = jax.random.split(key, 3)

    nin, nh, nout = 16, 32, 8
    params = _init_params(kp, nin, nh, nout)

    # 1) Small batch, exact-f32 path (single grid step): tight check.
    B1 = 8
    x_small = jax.random.normal(kx, (B1, nin), dtype=jnp.float32)
    out_f32 = jax.block_until_ready(
        mlp_forward(x_small, params, compute_dtype=jnp.float32))
    ref_small = mlp_ref(x_small, params)
    assert out_f32.shape == (B1, nout), out_f32.shape
    assert jnp.allclose(out_f32, ref_small, atol=1e-4, rtol=1e-4), (
        float(jnp.max(jnp.abs(out_f32 - ref_small))))

    # 2) Larger, non-multiple-of-tile batch: multi-step "parallel" grid
    #    (>= 2 steps => v7x dual-TC), padded last tile, bf16 MXU path.
    B2 = 1032
    x_big = jax.random.normal(kx2, (B2, nin), dtype=jnp.float32)
    out_bf16 = jax.block_until_ready(mlp_forward(x_big, params))
    ref_big = mlp_ref(x_big, params)
    assert out_bf16.shape == (B2, nout), out_bf16.shape
    assert jnp.allclose(out_bf16, ref_big, atol=5e-2, rtol=5e-2), (
        float(jnp.max(jnp.abs(out_bf16 - ref_big))))

    print("KERNEL_OK")
</pallas_src>

<mosaic_0001>
module attributes {stable_mosaic.version = 11 : i64} {
  func.func @_mlp_kernel(%arg0: i32, %arg1: memref<8x16xf32, #tpu.memory_space<vmem>>, %arg2: memref<16x32xf32, #tpu.memory_space<vmem>>, %arg3: memref<1x32xf32, #tpu.memory_space<vmem>>, %arg4: memref<32x32xf32, #tpu.memory_space<vmem>>, %arg5: memref<1x32xf32, #tpu.memory_space<vmem>>, %arg6: memref<32x32xf32, #tpu.memory_space<vmem>>, %arg7: memref<1x32xf32, #tpu.memory_space<vmem>>, %arg8: memref<32x8xf32, #tpu.memory_space<vmem>>, %arg9: memref<1x8xf32, #tpu.memory_space<vmem>>, %arg10: memref<8x8xf32, #tpu.memory_space<vmem>>) attributes {dimension_semantics = [#tpu.dimension_semantics<parallel>], iteration_bounds = array<i64: 1>, scalar_prefetch = 0 : i64, scratch_operands = 0 : i64, tpu.core_type = #tpu.core_type<tc>, window_params = [{transform_indices = @transform_0, window_bounds = array<i64: 8, 16>}, {pipeline_mode = #tpu.pipeline_mode<synchronous>, transform_indices = @transform_1, window_bounds = array<i64: 16, 32>}, {pipeline_mode = #tpu.pipeline_mode<synchronous>, transform_indices = @transform_2, window_bounds = array<i64: 1, 32>}, {pipeline_mode = #tpu.pipeline_mode<synchronous>, transform_indices = @transform_3, window_bounds = array<i64: 32, 32>}, {pipeline_mode = #tpu.pipeline_mode<synchronous>, transform_indices = @transform_4, window_bounds = array<i64: 1, 32>}, {pipeline_mode = #tpu.pipeline_mode<synchronous>, transform_indices = @transform_5, window_bounds = array<i64: 32, 32>}, {pipeline_mode = #tpu.pipeline_mode<synchronous>, transform_indices = @transform_6, window_bounds = array<i64: 1, 32>}, {pipeline_mode = #tpu.pipeline_mode<synchronous>, transform_indices = @transform_7, window_bounds = array<i64: 32, 8>}, {pipeline_mode = #tpu.pipeline_mode<synchronous>, transform_indices = @transform_8, window_bounds = array<i64: 1, 8>}, {transform_indices = @transform_9, window_bounds = array<i64: 8, 8>}]} {
    %c0 = arith.constant 0 : index
    %c0_0 = arith.constant 0 : index
    %0 = vector.load %arg1[%c0, %c0_0] : memref<8x16xf32, #tpu.memory_space<vmem>>, vector<8x16xf32>
    %c0_1 = arith.constant 0 : index
    %c0_2 = arith.constant 0 : index
    %1 = vector.load %arg2[%c0_1, %c0_2] : memref<16x32xf32, #tpu.memory_space<vmem>>, vector<16x32xf32>
    %cst = arith.constant dense<0.000000e+00> : vector<8x32xf32>
    %2 = tpu.matmul %0, %1, %cst {dimension_numbers = #tpu.dot_dimension_numbers<[1], [0], [0], [1], [0, 0, 1, 1], [], []>, precision = #tpu.contract_precision<fp32>} : vector<8x16xf32>, vector<16x32xf32>, vector<8x32xf32> -> vector<8x32xf32>
    %c0_3 = arith.constant 0 : index
    %c0_4 = arith.constant 0 : index
    %3 = vector.load %arg3[%c0_3, %c0_4] : memref<1x32xf32, #tpu.memory_space<vmem>>, vector<1x32xf32>
    %4 = vector.broadcast %3 : vector<1x32xf32> to vector<8x32xf32>
    %5 = arith.addf %2, %4 : vector<8x32xf32>
    %cst_5 = arith.constant 0.000000e+00 : f32
    %6 = vector.broadcast %cst_5 : f32 to vector<8x32xf32>
    %7 = arith.cmpf ogt, %5, %6 : vector<8x32xf32>
    %cst_6 = arith.constant 2.000000e-01 : f32
    %8 = vector.broadcast %cst_6 : f32 to vector<8x32xf32>
    %9 = arith.mulf %8, %5 : vector<8x32xf32>
    %10 = arith.select %7, %5, %9 : vector<8x32xi1>, vector<8x32xf32>
    %c0_7 = arith.constant 0 : index
    %c0_8 = arith.constant 0 : index
    %11 = vector.load %arg4[%c0_7, %c0_8] : memref<32x32xf32, #tpu.memory_space<vmem>>, vector<32x32xf32>
    %cst_9 = arith.constant dense<0.000000e+00> : vector<8x32xf32>
    %12 = tpu.matmul %10, %11, %cst_9 {dimension_numbers = #tpu.dot_dimension_numbers<[1], [0], [0], [1], [0, 0, 1, 1], [], []>, precision = #tpu.contract_precision<fp32>} : vector<8x32xf32>, vector<32x32xf32>, vector<8x32xf32> -> vector<8x32xf32>
    %c0_10 = arith.constant 0 : index
    %c0_11 = arith.constant 0 : index
    %13 = vector.load %arg5[%c0_10, %c0_11] : memref<1x32xf32, #tpu.memory_space<vmem>>, vector<1x32xf32>
    %14 = vector.broadcast %13 : vector<1x32xf32> to vector<8x32xf32>
    %15 = arith.addf %12, %14 : vector<8x32xf32>
    %cst_12 = arith.constant 0.000000e+00 : f32
    %16 = vector.broadcast %cst_12 : f32 to vector<8x32xf32>
    %17 = arith.cmpf ogt, %15, %16 : vector<8x32xf32>
    %cst_13 = arith.constant 2.000000e-01 : f32
    %18 = vector.broadcast %cst_13 : f32 to vector<8x32xf32>
    %19 = arith.mulf %18, %15 : vector<8x32xf32>
    %20 = arith.select %17, %15, %19 : vector<8x32xi1>, vector<8x32xf32>
    %c0_14 = arith.constant 0 : index
    %c0_15 = arith.constant 0 : index
    %21 = vector.load %arg6[%c0_14, %c0_15] : memref<32x32xf32, #tpu.memory_space<vmem>>, vector<32x32xf32>
    %cst_16 = arith.constant dense<0.000000e+00> : vector<8x32xf32>
    %22 = tpu.matmul %20, %21, %cst_16 {dimension_numbers = #tpu.dot_dimension_numbers<[1], [0], [0], [1], [0, 0, 1, 1], [], []>, precision = #tpu.contract_precision<fp32>} : vector<8x32xf32>, vector<32x32xf32>, vector<8x32xf32> -> vector<8x32xf32>
    %c0_17 = arith.constant 0 : index
    %c0_18 = arith.constant 0 : index
    %23 = vector.load %arg7[%c0_17, %c0_18] : memref<1x32xf32, #tpu.memory_space<vmem>>, vector<1x32xf32>
    %24 = vector.broadcast %23 : vector<1x32xf32> to vector<8x32xf32>
    %25 = arith.addf %22, %24 : vector<8x32xf32>
    %cst_19 = arith.constant 0.000000e+00 : f32
    %26 = vector.broadcast %cst_19 : f32 to vector<8x32xf32>
    %27 = arith.cmpf ogt, %25, %26 : vector<8x32xf32>
    %cst_20 = arith.constant 2.000000e-01 : f32
    %28 = vector.broadcast %cst_20 : f32 to vector<8x32xf32>
    %29 = arith.mulf %28, %25 : vector<8x32xf32>
    %30 = arith.select %27, %25, %29 : vector<8x32xi1>, vector<8x32xf32>
    %c0_21 = arith.constant 0 : index
    %c0_22 = arith.constant 0 : index
    %31 = vector.load %arg8[%c0_21, %c0_22] : memref<32x8xf32, #tpu.memory_space<vmem>>, vector<32x8xf32>
    %cst_23 = arith.constant dense<0.000000e+00> : vector<8x8xf32>
    %32 = tpu.matmul %30, %31, %cst_23 {dimension_numbers = #tpu.dot_dimension_numbers<[1], [0], [0], [1], [0, 0, 1, 1], [], []>, precision = #tpu.contract_precision<fp32>} : vector<8x32xf32>, vector<32x8xf32>, vector<8x8xf32> -> vector<8x8xf32>
    %c0_24 = arith.constant 0 : index
    %c0_25 = arith.constant 0 : index
    %33 = vector.load %arg9[%c0_24, %c0_25] : memref<1x8xf32, #tpu.memory_space<vmem>>, vector<1x8xf32>
    %34 = vector.broadcast %33 : vector<1x8xf32> to vector<8x8xf32>
    %35 = arith.addf %32, %34 : vector<8x8xf32>
    %c0_26 = arith.constant 0 : index
    %c0_27 = arith.constant 0 : index
    %36 = vector.load %arg10[%c0_26, %c0_27] : memref<8x8xf32, #tpu.memory_space<vmem>>, vector<8x8xf32>
    tpu.vector_store %arg10[%c0_26, %c0_27], %35 {strides = array<i32>} : memref<8x8xf32, #tpu.memory_space<vmem>>, vector<8x8xf32>,
    return
  }
  func.func @transform_0(%arg0: i32) -> (i32, i32) {
    %c0_i32 = arith.constant 0 : i32
    %c0_i32_0 = arith.constant 0 : i32
    return %arg0, %c0_i32 : i32, i32
  }
  func.func @transform_1(%arg0: i32) -> (i32, i32) {
    %c0_i32 = arith.constant 0 : i32
    %c0_i32_0 = arith.constant 0 : i32
    %c0_i32_1 = arith.constant 0 : i32
    return %c0_i32, %c0_i32_0 : i32, i32
  }
  func.func @transform_2(%arg0: i32) -> (i32, i32) {
    %c0_i32 = arith.constant 0 : i32
    %c0_i32_0 = arith.constant 0 : i32
    %c0_i32_1 = arith.constant 0 : i32
    return %c0_i32, %c0_i32_0 : i32, i32
  }
  func.func @transform_3(%arg0: i32) -> (i32, i32) {
    %c0_i32 = arith.constant 0 : i32
    %c0_i32_0 = arith.constant 0 : i32
    %c0_i32_1 = arith.constant 0 : i32
    return %c0_i32, %c0_i32_0 : i32, i32
  }
  func.func @transform_4(%arg0: i32) -> (i32, i32) {
    %c0_i32 = arith.constant 0 : i32
    %c0_i32_0 = arith.constant 0 : i32
    %c0_i32_1 = arith.constant 0 : i32
    return %c0_i32, %c0_i32_0 : i32, i32
  }
  func.func @transform_5(%arg0: i32) -> (i32, i32) {
    %c0_i32 = arith.constant 0 : i32
    %c0_i32_0 = arith.constant 0 : i32
    %c0_i32_1 = arith.constant 0 : i32
    return %c0_i32, %c0_i32_0 : i32, i32
  }
  func.func @transform_6(%arg0: i32) -> (i32, i32) {
    %c0_i32 = arith.constant 0 : i32
    %c0_i32_0 = arith.constant 0 : i32
    %c0_i32_1 = arith.constant 0 : i32
    return %c0_i32, %c0_i32_0 : i32, i32
  }
  func.func @transform_7(%arg0: i32) -> (i32, i32) {
    %c0_i32 = arith.constant 0 : i32
    %c0_i32_0 = arith.constant 0 : i32
    %c0_i32_1 = arith.constant 0 : i32
    return %c0_i32, %c0_i32_0 : i32, i32
  }
  func.func @transform_8(%arg0: i32) -> (i32, i32) {
    %c0_i32 = arith.constant 0 : i32
    %c0_i32_0 = arith.constant 0 : i32
    %c0_i32_1 = arith.constant 0 : i32
    return %c0_i32, %c0_i32_0 : i32, i32
  }
  func.func @transform_9(%arg0: i32) -> (i32, i32) {
    %c0_i32 = arith.constant 0 : i32
    %c0_i32_0 = arith.constant 0 : i32
    return %arg0, %c0_i32 : i32, i32
  }
}

module attributes {stable_mosaic.version = 11 : i64} {
  func.func @_mlp_kernel(%arg0: i32, %arg1: memref<8x16xf32, #tpu.memory_space<vmem>>, %arg2: memref<16x32xf32, #tpu.memory_space<vmem>>, %arg3: memref<1x32xf32, #tpu.memory_space<vmem>>, %arg4: memref<32x32xf32, #tpu.memory_space<vmem>>, %arg5: memref<1x32xf32, #tpu.memory_space<vmem>>, %arg6: memref<32x32xf32, #tpu.memory_space<vmem>>, %arg7: memref<1x32xf32, #tpu.memory_space<vmem>>, %arg8: memref<32x8xf32, #tpu.memory_space<vmem>>, %arg9: memref<1x8xf32, #tpu.memory_space<vmem>>, %arg10: memref<8x8xf32, #tpu.memory_space<vmem>>) attributes {dimension_semantics = [#tpu.dimension_semantics<parallel>], iteration_bounds = array<i64: 1>, scalar_prefetch = 0 : i64, scratch_operands = 0 : i64, tpu.core_type = #tpu.core_type<tc>, window_params = [{transform_indices = @transform_0, window_bounds = array<i64: 8, 16>}, {pipeline_mode = #tpu.pipeline_mode<synchronous>, transform_indices = @transform_1, window_bounds = array<i64: 16, 32>}, {pipeline_mode = #tpu.pipeline_mode<synchronous>, transform_indices = @transform_2, window_bounds = array<i64: 1, 32>}, {pipeline_mode = #tpu.pipeline_mode<synchronous>, transform_indices = @transform_3, window_bounds = array<i64: 32, 32>}, {pipeline_mode = #tpu.pipeline_mode<synchronous>, transform_indices = @transform_4, window_bounds = array<i64: 1, 32>}, {pipeline_mode = #tpu.pipeline_mode<synchronous>, transform_indices = @transform_5, window_bounds = array<i64: 32, 32>}, {pipeline_mode = #tpu.pipeline_mode<synchronous>, transform_indices = @transform_6, window_bounds = array<i64: 1, 32>}, {pipeline_mode = #tpu.pipeline_mode<synchronous>, transform_indices = @transform_7, window_bounds = array<i64: 32, 8>}, {pipeline_mode = #tpu.pipeline_mode<synchronous>, transform_indices = @transform_8, window_bounds = array<i64: 1, 8>}, {transform_indices = @transform_9, window_bounds = array<i64: 8, 8>}]} {
    %c0 = arith.constant 0 : index
    %c0_0 = arith.constant 0 : index
    %0 = vector.load %arg1[%c0, %c0_0] : memref<8x16xf32, #tpu.memory_space<vmem>>, vector<8x16xf32>
    %c0_1 = arith.constant 0 : index
    %c0_2 = arith.constant 0 : index
    %1 = vector.load %arg2[%c0_1, %c0_2] : memref<16x32xf32, #tpu.memory_space<vmem>>, vector<16x32xf32>
    %cst = arith.constant dense<0.000000e+00> : vector<8x32xf32>
    %2 = tpu.matmul %0, %1, %cst {dimension_numbers = #tpu.dot_dimension_numbers<[1], [0], [0], [1], [0, 0, 1, 1], [], []>, precision = #tpu.contract_precision<fp32>} : vector<8x16xf32>, vector<16x32xf32>, vector<8x32xf32> -> vector<8x32xf32>
    %c0_3 = arith.constant 0 : index
    %c0_4 = arith.constant 0 : index
    %3 = vector.load %arg3[%c0_3, %c0_4] : memref<1x32xf32, #tpu.memory_space<vmem>>, vector<1x32xf32>
    %4 = vector.broadcast %3 : vector<1x32xf32> to vector<8x32xf32>
    %5 = arith.addf %2, %4 : vector<8x32xf32>
    %cst_5 = arith.constant 0.000000e+00 : f32
    %6 = vector.broadcast %cst_5 : f32 to vector<8x32xf32>
    %7 = arith.cmpf ogt, %5, %6 : vector<8x32xf32>
    %cst_6 = arith.constant 2.000000e-01 : f32
    %8 = vector.broadcast %cst_6 : f32 to vector<8x32xf32>
    %9 = arith.mulf %8, %5 : vector<8x32xf32>
    %10 = arith.select %7, %5, %9 : vector<8x32xi1>, vector<8x32xf32>
    %c0_7 = arith.constant 0 : index
    %c0_8 = arith.constant 0 : index
    %11 = vector.load %arg4[%c0_7, %c0_8] : memref<32x32xf32, #tpu.memory_space<vmem>>, vector<32x32xf32>
    %cst_9 = arith.constant dense<0.000000e+00> : vector<8x32xf32>
    %12 = tpu.matmul %10, %11, %cst_9 {dimension_numbers = #tpu.dot_dimension_numbers<[1], [0], [0], [1], [0, 0, 1, 1], [], []>, precision = #tpu.contract_precision<fp32>} : vector<8x32xf32>, vector<32x32xf32>, vector<8x32xf32> -> vector<8x32xf32>
    %c0_10 = arith.constant 0 : index
    %c0_11 = arith.constant 0 : index
    %13 = vector.load %arg5[%c0_10, %c0_11] : memref<1x32xf32, #tpu.memory_space<vmem>>, vector<1x32xf32>
    %14 = vector.broadcast %13 : vector<1x32xf32> to vector<8x32xf32>
    %15 = arith.addf %12, %14 : vector<8x32xf32>
    %cst_12 = arith.constant 0.000000e+00 : f32
    %16 = vector.broadcast %cst_12 : f32 to vector<8x32xf32>
    %17 = arith.cmpf ogt, %15, %16 : vector<8x32xf32>
    %cst_13 = arith.constant 2.000000e-01 : f32
    %18 = vector.broadcast %cst_13 : f32 to vector<8x32xf32>
    %19 = arith.mulf %18, %15 : vector<8x32xf32>
    %20 = arith.select %17, %15, %19 : vector<8x32xi1>, vector<8x32xf32>
    %c0_14 = arith.constant 0 : index
    %c0_15 = arith.constant 0 : index
    %21 = vector.load %arg6[%c0_14, %c0_15] : memref<32x32xf32, #tpu.memory_space<vmem>>, vector<32x32xf32>
    %cst_16 = arith.constant dense<0.000000e+00> : vector<8x32xf32>
    %22 = tpu.matmul %20, %21, %cst_16 {dimension_numbers = #tpu.dot_dimension_numbers<[1], [0], [0], [1], [0, 0, 1, 1], [], []>, precision = #tpu.contract_precision<fp32>} : vector<8x32xf32>, vector<32x32xf32>, vector<8x32xf32> -> vector<8x32xf32>
    %c0_17 = arith.constant 0 : index
    %c0_18 = arith.constant 0 : index
    %23 = vector.load %arg7[%c0_17, %c0_18] : memref<1x32xf32, #tpu.memory_space<vmem>>, vector<1x32xf32>
    %24 = vector.broadcast %23 : vector<1x32xf32> to vector<8x32xf32>
    %25 = arith.addf %22, %24 : vector<8x32xf32>
    %cst_19 = arith.constant 0.000000e+00 : f32
    %26 = vector.broadcast %cst_19 : f32 to vector<8x32xf32>
    %27 = arith.cmpf ogt, %25, %26 : vector<8x32xf32>
    %cst_20 = arith.constant 2.000000e-01 : f32
    %28 = vector.broadcast %cst_20 : f32 to vector<8x32xf32>
    %29 = arith.mulf %28, %25 : vector<8x32xf32>
    %30 = arith.select %27, %25, %29 : vector<8x32xi1>, vector<8x32xf32>
    %c0_21 = arith.constant 0 : index
    %c0_22 = arith.constant 0 : index
    %31 = vector.load %arg8[%c0_21, %c0_22] : memref<32x8xf32, #tpu.memory_space<vmem>>, vector<32x8xf32>
    %cst_23 = arith.constant dense<0.000000e+00> : vector<8x8xf32>
    %32 = tpu.matmul %30, %31, %cst_23 {dimension_numbers = #tpu.dot_dimension_numbers<[1], [0], [0], [1], [0, 0, 1, 1], [], []>, precision = #tpu.contract_precision<fp32>} : vector<8x32xf32>, vector<32x8xf32>, vector<8x8xf32> -> vector<8x8xf32>
    %c0_24 = arith.constant 0 : index
    %c0_25 = arith.constant 0 : index
    %33 = vector.load %arg9[%c0_24, %c0_25] : memref<1x8xf32, #tpu.memory_space<vmem>>, vector<1x8xf32>
    %34 = vector.broadcast %33 : vector<1x8xf32> to vector<8x8xf32>
    %35 = arith.addf %32, %34 : vector<8x8xf32>
    %c0_26 = arith.constant 0 : index
    %c0_27 = arith.constant 0 : index
    %36 = vector.load %arg10[%c0_26, %c0_27] : memref<8x8xf32, #tpu.memory_space<vmem>>, vector<8x8xf32>
    tpu.vector_store %arg10[%c0_26, %c0_27], %35 {strides = array<i32>} : memref<8x8xf32, #tpu.memory_space<vmem>>, vector<8x8xf32>,
    return
  }
  func.func @transform_0(%arg0: i32) -> (i32, i32) {
    %c0_i32 = arith.constant 0 : i32
    %c0_i32_0 = arith.constant 0 : i32
    return %arg0, %c0_i32 : i32, i32
  }
  func.func @transform_1(%arg0: i32) -> (i32, i32) {
    %c0_i32 = arith.constant 0 : i32
    %c0_i32_0 = arith.constant 0 : i32
    %c0_i32_1 = arith.constant 0 : i32
    return %c0_i32, %c0_i32_0 : i32, i32
  }
  func.func @transform_2(%arg0: i32) -> (i32, i32) {
    %c0_i32 = arith.constant 0 : i32
    %c0_i32_0 = arith.constant 0 : i32
    %c0_i32_1 = arith.constant 0 : i32
    return %c0_i32, %c0_i32_0 : i32, i32
  }
  func.func @transform_3(%arg0: i32) -> (i32, i32) {
    %c0_i32 = arith.constant 0 : i32
    %c0_i32_0 = arith.constant 0 : i32
    %c0_i32_1 = arith.constant 0 : i32
    return %c0_i32, %c0_i32_0 : i32, i32
  }
  func.func @transform_4(%arg0: i32) -> (i32, i32) {
    %c0_i32 = arith.constant 0 : i32
    %c0_i32_0 = arith.constant 0 : i32
    %c0_i32_1 = arith.constant 0 : i32
    return %c0_i32, %c0_i32_0 : i32, i32
  }
  func.func @transform_5(%arg0: i32) -> (i32, i32) {
    %c0_i32 = arith.constant 0 : i32
    %c0_i32_0 = arith.constant 0 : i32
    %c0_i32_1 = arith.constant 0 : i32
    return %c0_i32, %c0_i32_0 : i32, i32
  }
  func.func @transform_6(%arg0: i32) -> (i32, i32) {
    %c0_i32 = arith.constant 0 : i32
    %c0_i32_0 = arith.constant 0 : i32
    %c0_i32_1 = arith.constant 0 : i32
    return %c0_i32, %c0_i32_0 : i32, i32
  }
  func.func @transform_7(%arg0: i32) -> (i32, i32) {
    %c0_i32 = arith.constant 0 : i32
    %c0_i32_0 = arith.constant 0 : i32
    %c0_i32_1 = arith.constant 0 : i32
    return %c0_i32, %c0_i32_0 : i32, i32
  }
  func.func @transform_8(%arg0: i32) -> (i32, i32) {
    %c0_i32 = arith.constant 0 : i32
    %c0_i32_0 = arith.constant 0 : i32
    %c0_i32_1 = arith.constant 0 : i32
    return %c0_i32, %c0_i32_0 : i32, i32
  }
  func.func @transform_9(%arg0: i32) -> (i32, i32) {
    %c0_i32 = arith.constant 0 : i32
    %c0_i32_0 = arith.constant 0 : i32
    return %arg0, %c0_i32 : i32, i32
  }
}

</mosaic_0001>

<bundles_post_ra>
// kernel: tpu_custom_call.1
= control target key start
LH: loop header
LB: loop body
LE: loop exit
PB: predicated region body
PF: predicated region fallthrough
CT: control target
= control target key end

     0   :  { %14 = vsyncpa [#allocation3], 0  ;;  %s1046_s0 = inlined_call_operand.vmem [shape: f32[8,16], index: 0, kind: input, shape index: {}]   ;;  %s1047_s1 = inlined_call_operand.hbm [shape: f32[16,32], index: 1, kind: input, shape index: {}]   ;;  %s1048_s2 = inlined_call_operand.vmem [shape: f32[1,32], index: 2, kind: input, shape index: {}]   ;;  %s1049_s3 = inlined_call_operand.vmem [shape: f32[32,32], index: 3, kind: input, shape index: {}]   ;;  %s1050_s4 = inlined_call_operand.vmem [shape: f32[1,32], index: 4, kind: input, shape index: {}]   ;;  %s1051_s5 = inlined_call_operand.hbm [shape: f32[32,32], index: 5, kind: input, shape index: {}]   ;;  %s1052_s6 = inlined_call_operand.vmem [shape: f32[1,32], index: 6, kind: input, shape index: {}]   ;;  %s1053_s7 = inlined_call_operand.vmem [shape: f32[32,8], index: 7, kind: input, shape index: {}]   ;;  %s1054_s8 = inlined_call_operand.vmem [shape: f32[1,8], index: 8, kind: input, shape index: {}]   ;;  %s1055_s9 = inlined_call_operand.hbm [shape: f32[8,8], index: 9, kind: output, shape index: {}]  }
   0x1   :  { %15 = vsyncpa [#allocation6], 0 }
   0x2   :  { %16 = vsyncpa [#allocation4], 0  ;;  %s23_s11 = sshll.u32 %s1047_s1, 4  ;;  %s940_s12 = smov [#allocation2]   ;;  %s24_s11 = int_to_ptr.hbm [resolvable:$true] %s23_s11 }
   0x3   :  { %s25_s13 = sshll.u32 %s940_s12, 4  ;;  %s42_s16 = sshll.u32 %s1051_s5, 4  ;;  %s26_s13 = int_to_ptr.vmem [resolvable:$true] %s25_s13  ;;  %s43_s16 = int_to_ptr.hbm [resolvable:$true] %s42_s16 }
   0x4   :  { %s941_s17 = smov 128   ;;  %s942_s18 = smov 8  }
   0x5   :  { %31 = dma.hbm_to_vmem [thread:$0]  %s24_s11, 256, %s26_s13, [#allocation3], %s941_s17, %s941_s17, %s942_s18  }
   0x6   :  { %s943_s19 = smov [#allocation5]  }
   0x7   :  { %s44_s20 = sshll.u32 %s943_s19, 4  ;;  %s45_s20 = int_to_ptr.vmem [resolvable:$true] %s44_s20 }
   0x8   :  { %50 = dma.hbm_to_vmem [thread:$0]  %s43_s16, 512, %s45_s20, [#allocation6], %s941_s17, %s941_s17, %s942_s18  }
   0x9   :  { %934 = dma.done.wait [#allocation3], 256  }
   0xa   :  { %935 = vsyncadd [#allocation3], 4294967040 }
   0xb   :  { %936 = dma.done.wait [#allocation6], 512  }
   0xc   :  { %937 = vsyncadd [#allocation6], 4294966784  ;;  %vm72_vm0 = vcmask 130048   ;;  %v67_v0 = vld [vmem:[#allocation2 + $0x8] sm:$0xff]  ;;  %v66_v1 = vld [vmem:[#allocation2] sm:$0xff]  ;;  %vm246_vm2 = vcmask 261120  }
   0xd   :  { %v65_v2 = vld [vmem:[%s1046_s0] sm:$0xff]  ;;  %v90_v3 = vand.u32 4294901760, %v67_v0  ;;  %v92_v4 = vand.u32 4294901760, %v66_v1  ;;  %v241_v19 = vld [vmem:[%s1049_s3 + $0x18] sm:$0xff]  ;;  %v240_v21 = vld [vmem:[%s1049_s3 + $0x10] sm:$0xff]  ;;  %s944_s18 = smov [#allocation7]  }
   0xe   :  { %v74_v5 = vsel %vm72_vm0, %v65_v2, 0  ;;  %v262_v20 = vand.u32 4294901760, %v241_v19  ;;  %v264_v23 = vand.u32 4294901760, %v240_v21  ;;  %v239_v24 = vld [vmem:[%s1049_s3 + $0x8] sm:$0xff]  ;;  %v238_v28 = vld [vmem:[%s1049_s3] sm:$0xff]  ;;  %s840_s19 = sshll.u32 %s944_s18, 4  ;;  %s841_s19 = int_to_ptr.vmem [resolvable:$true] %s840_s19 }
   0xf   :  { %v94_v6 = vand.u32 4294901760, %v74_v5  ;;  %v118_v7 = vsub.f32 %v67_v0, %v90_v3  ;;  %91 = vmatpush.msra.mxu0 %v90_v3  ;;  %v124_v8 = vsub.f32 %v66_v1, %v92_v4  ;;  %175 = vmatpush.msra.mxu3 %v90_v3  ;;  %v266_v27 = vand.u32 4294901760, %v239_v24  ;;  %v858_v43 = vld [vmem:[%s1048_s2] ss:$0 sm:$0xff]  ;;  %v441_v0 = vld [vmem:[#allocation5 + $0x18] sm:$0xff]  ;;  %s842_s21 = sshll.u32 %s1055_s9, 4  ;;  %s843_s21 = int_to_ptr.hbm [resolvable:$true] %s842_s21 }
  0x10   :  { %v292_v22 = vsub.f32 %v241_v19, %v262_v20  ;;  %v298_v26 = vsub.f32 %v240_v21, %v264_v23  ;;  %v268_v32 = vand.u32 4294901760, %v238_v28  ;;  %v461_v1 = vand.u32 4294901760, %v441_v0  ;;  %v440_v2 = vld [vmem:[#allocation5 + $0x10] sm:$0xff] }
  0x11   :  { %v95_v9 = vsub.f32 %v74_v5, %v94_v6  ;;  %150 = vmatpush.msra.mxu2 %v118_v7  ;;  %93 = vmatpush.msra.mxu0 %v92_v4  ;;  %v119_v10 = vand.u32 4294901760, %v118_v7  ;;  %v125_v11 = vand.u32 4294901760, %v124_v8  ;;  %v304_v31 = vsub.f32 %v239_v24, %v266_v27  ;;  %v439_v5 = vld [vmem:[#allocation5 + $0x8] sm:$0xff]  ;;  %v859_v24 = vld [vmem:[%s1050_s4] ss:$0 sm:$0xff] }
  0x12   :  { %177 = vmatpush.msra.mxu3 %v92_v4  ;;  %v293_v25 = vand.u32 4294901760, %v292_v22  ;;  %v299_v30 = vand.u32 4294901760, %v298_v26  ;;  %v310_v36 = vsub.f32 %v238_v28, %v268_v32  ;;  %vm833_vm5 = vcmask 64512  }
  0x13   :  { %v96_v12 = vand.u32 4294901760, %v95_v9  ;;  %153 = vmatpush.msra.mxu2 %v124_v8  ;;  %v120_v13 = vsub.f32 %v118_v7, %v119_v10  ;;  %202 = vmatpush.msrb.mxu0 %v119_v10  ;;  %v126_v14 = vsub.f32 %v124_v8, %v125_v11  ;;  %v305_v35 = vand.u32 4294901760, %v304_v31 }
  0x14   :  { %156 = vmatmul.f32.vlgmr.msra.gmra.mxu2 %v95_v9  ;;  %v294_v29 = vsub.f32 %v292_v22, %v293_v25  ;;  %v300_v34 = vsub.f32 %v298_v26, %v299_v30  ;;  %v311_v39 = vand.u32 4294901760, %v310_v36  ;;  %v465_v8 = vand.u32 4294901760, %v439_v5 }
  0x15   :  { %v97_v15 = vsub.f32 %v95_v9, %v96_v12  ;;  %181 = vmatmul.f32.vlgmr.msra.gmra.mxu3 %v96_v12  ;;  %v121_v16 = vand.u32 4294901760, %v120_v13  ;;  %v127_v17 = vand.u32 4294901760, %v126_v14  ;;  %206 = vmatpush.msrb.mxu0 %v125_v11  ;;  %v306_v38 = vsub.f32 %v304_v31, %v305_v35  ;;  %v438_v9 = vld [vmem:[#allocation5] sm:$0xff] }
  0x16   :  { %263 = vmatpush.msrb.mxu2 %v262_v20  ;;  %v295_v33 = vand.u32 4294901760, %v294_v29  ;;  %v301_v37 = vand.u32 4294901760, %v300_v34  ;;  %v312_v41 = vsub.f32 %v310_v36, %v311_v39  ;;  %v503_v12 = vsub.f32 %v439_v5, %v465_v8  ;;  %v860_v5 = vld [vmem:[%s1052_s6] ss:$0 sm:$0xff] }
  0x17   :  { %v98_v18 = vand.u32 4294901760, %v97_v15  ;;  %122 = vmatpush.msra.mxu1 %v121_v16  ;;  %v307_v40 = vand.u32 4294901760, %v306_v38  ;;  %v467_v13 = vand.u32 4294901760, %v438_v9 }
  0x18   :  { %265 = vmatpush.msrb.mxu2 %v264_v23  ;;  %296 = vmatpush.msrb.mxu3 %v295_v33  ;;  %v313_v42 = vand.u32 4294901760, %v312_v41  ;;  %v504_v16 = vand.u32 4294901760, %v503_v12 }
  0x19   :  { %99 = vmatmul.f32.vlgmr.msra.gmra.mxu0 %v98_v18  ;;  %128 = vmatpush.msra.mxu1 %v127_v17  ;;  %v509_v17 = vsub.f32 %v438_v9, %v467_v13 }
  0x1a   :  { %130 = vmatmul.f32.vlgmr.msra.gmra.mxu1 %v94_v6  ;;  %334 = vmatpush.msra.mxu0 %v292_v22  ;;  %v505_v19 = vsub.f32 %v503_v12, %v504_v16 }
  0x1b   :  { %227 = vmatpush.msrb.mxu1 %v90_v3  ;;  %267 = vmatpush.msrb.mxu2 %v266_v27  ;;  %v491_v3 = vsub.f32 %v441_v0, %v461_v1 }
  0x1c   :  { %337 = vmatpush.msra.mxu0 %v298_v26  ;;  %302 = vmatpush.msrb.mxu3 %v301_v37  ;;  %v506_v21 = vand.u32 4294901760, %v505_v19 }
  0x1d   :  { %229 = vmatpush.msrb.mxu1 %v92_v4  ;;  %269 = vmatpush.msrb.mxu2 %v268_v32  ;;  %v463_v4 = vand.u32 4294901760, %v440_v2 }
  0x1e   :  { %340 = vmatpush.msra.mxu0 %v304_v31  ;;  %308 = vmatpush.msrb.mxu3 %v307_v40 }
  0x1f   :  { %363 = vmatpush.msra.mxu1 %v262_v20  ;;  %392 = vmatpush.msra.mxu2 %v293_v25  ;;  %v497_v7 = vsub.f32 %v440_v2, %v463_v4 }
  0x20   :  { %343 = vmatpush.msra.mxu0 %v310_v36  ;;  %314 = vmatpush.msrb.mxu3 %v313_v42 }
  0x21   :  { %208 = vmatmul.f32.vlgmr.msrb.gmra.mxu0 %v94_v6  ;;  %365 = vmatpush.msra.mxu1 %v264_v23  ;;  %v498_v11 = vand.u32 4294901760, %v497_v7 }
  0x22   :  { %231 = vmatmul.f32.vlgmr.msrb.gmra.mxu1 %v94_v6  ;;  %396 = vmatpush.msra.mxu2 %v299_v30  ;;  %v492_v6 = vand.u32 4294901760, %v491_v3 }
  0x23   :  { %367 = vmatpush.msra.mxu1 %v266_v27  ;;  %423 = vmatpush.msra.mxu3 %v262_v20  ;;  %v499_v15 = vsub.f32 %v497_v7, %v498_v11  ;;  %v510_v20 = vand.u32 4294901760, %v509_v17 }
  0x24   :  { %400 = vmatpush.msra.mxu2 %v305_v35  ;;  %462 = vmatpush.msrb.mxu0 %v461_v1  ;;  %v493_v10 = vsub.f32 %v491_v3, %v492_v6 }
  0x25   :  { %369 = vmatpush.msra.mxu1 %v268_v32  ;;  %425 = vmatpush.msra.mxu3 %v264_v23  ;;  %v500_v18 = vand.u32 4294901760, %v499_v15  ;;  %v511_v22 = vsub.f32 %v509_v17, %v510_v20 }
  0x26   :  { %404 = vmatpush.msra.mxu2 %v311_v39  ;;  %464 = vmatpush.msrb.mxu0 %v463_v4  ;;  %v494_v14 = vand.u32 4294901760, %v493_v10 }
  0x27   :  { %427 = vmatpush.msra.mxu3 %v266_v27  ;;  %v512_v23 = vand.u32 4294901760, %v511_v22 }
  0x28   :  { %466 = vmatpush.msrb.mxu0 %v465_v8  ;;  %495 = vmatpush.msrb.mxu1 %v494_v14 }
  0x29   :  { %429 = vmatpush.msra.mxu3 %v268_v32 }
  0x2a   :  { %468 = vmatpush.msrb.mxu0 %v467_v13  ;;  %501 = vmatpush.msrb.mxu1 %v500_v18 }
  0x2c   :  { %507 = vmatpush.msrb.mxu1 %v506_v21 }
  0x2e   :  { %513 = vmatpush.msrb.mxu1 %v512_v23 }
  0x96   :  { %v100_v44 = vpop.f32.mrf.mxu0 }
  0x97   :  { %v101_v45 = vadd.f32 %v858_v43, %v100_v44  ;;  %v131_v46 = vpop.f32.mrf.mxu1  ;;  %v157_v47 = vpop.f32.mrf.mxu2 }
  0x98   :  { %v182_v49 = vpop.f32.mrf.mxu3 }
  0x99   :  { %v132_v48 = vadd.f32 %v131_v46, %v101_v45  ;;  %v640_v45 = vld [vmem:[%s1053_s7 + $0x18] sm:$0xff] }
  0x9a   :  { %v660_v46 = vand.u32 4294901760, %v640_v45 }
  0x9b   :  { %v158_v50 = vadd.f32 %v157_v47, %v132_v48  ;;  %v639_v47 = vld [vmem:[%s1053_s7 + $0x10] sm:$0xff] }
  0x9c   :  { %v690_v48 = vsub.f32 %v640_v45, %v660_v46 }
  0x9d   :  { %v183_v51 = vadd.f32 %v182_v49, %v158_v50  ;;  %v662_v49 = vand.u32 4294901760, %v639_v47  ;;  %v638_v50 = vld [vmem:[%s1053_s7 + $0x8] sm:$0xff] }
  0x9e   :  { %v209_v52 = vpop.f32.mrf.mxu0 }
  0x9f   :  { %v210_v53 = vadd.f32 %v209_v52, %v183_v51  ;;  %v232_v54 = vpop.f32.mrf.mxu1  ;;  %v691_v51 = vand.u32 4294901760, %v690_v48  ;;  %v696_v52 = vsub.f32 %v639_v47, %v662_v49 }
  0xa1   :  { %v233_v55 = vadd.f32 %v232_v54, %v210_v53  ;;  %v664_v53 = vand.u32 4294901760, %v638_v50  ;;  %v637_v54 = vld [vmem:[%s1053_s7] sm:$0xff] }
  0xa3   :  { %vm235_vm1 = vcmp.gt.f32.partialorder %v233_v55, 0.0  ;;  %v236_v56 = vmul.f32 0.2, %v233_v55 }
  0xa5   :  { %v237_v57 = vsel %vm235_vm1, %v233_v55, %v236_v56  ;;  %v692_v55 = vsub.f32 %v690_v48, %v691_v51  ;;  %v697_v56 = vand.u32 4294901760, %v696_v52 }
  0xa6   :  { %v248_v58 = vsel %vm246_vm2, %v237_v57, 0  ;;  %v702_v57 = vsub.f32 %v638_v50, %v664_v53 }
  0xa7   :  { %v270_v59 = vand.u32 4294901760, %v248_v58 }
  0xa9   :  { %v271_v60 = vsub.f32 %v248_v58, %v270_v59  ;;  %316 = vmatmul.f32.vlgmr.msrb.gmra.mxu3 %v270_v59  ;;  %v666_v58 = vand.u32 4294901760, %v637_v54 }
  0xaa   :  { %562 = vmatpush.msrb.mxu3 %v461_v1 }
  0xab   :  { %346 = vmatmul.f32.vlgmr.msra.gmra.mxu0 %v271_v60  ;;  %v272_v61 = vand.u32 4294901760, %v271_v60 }
  0xac   :  { %564 = vmatpush.msrb.mxu3 %v463_v4  ;;  %591 = vmatpush.msra.mxu0 %v492_v6 }
  0xad   :  { %373 = vmatmul.f32.vlgmr.msra.gmra.mxu1 %v272_v61  ;;  %v273_v62 = vsub.f32 %v271_v60, %v272_v61  ;;  %v698_v60 = vsub.f32 %v696_v52, %v697_v56  ;;  %v703_v61 = vand.u32 4294901760, %v702_v57 }
  0xae   :  { %566 = vmatpush.msrb.mxu3 %v465_v8  ;;  %595 = vmatpush.msra.mxu0 %v498_v11 }
  0xaf   :  { %v274_v63 = vand.u32 4294901760, %v273_v62  ;;  %622 = vmatpush.msra.mxu1 %v461_v1  ;;  %v708_v62 = vsub.f32 %v637_v54, %v666_v58  ;;  %v704_v0 = vsub.f32 %v702_v57, %v703_v61 }
  0xb0   :  { %568 = vmatpush.msrb.mxu3 %v467_v13  ;;  %599 = vmatpush.msra.mxu0 %v504_v16 }
  0xb1   :  { %275 = vmatmul.f32.vlgmr.msrb.gmra.mxu2 %v274_v63  ;;  %431 = vmatmul.f32.vlgmr.msra.gmra.mxu3 %v270_v59  ;;  %v699_v63 = vand.u32 4294901760, %v698_v60  ;;  %v709_v1 = vand.u32 4294901760, %v708_v62  ;;  %v705_v2 = vand.u32 4294901760, %v704_v0 }
  0xb2   :  { %533 = vmatpush.msrb.mxu2 %v491_v3  ;;  %603 = vmatpush.msra.mxu0 %v510_v20 }
  0xb3   :  { %624 = vmatpush.msra.mxu1 %v463_v4  ;;  %v710_v3 = vsub.f32 %v708_v62, %v709_v1 }
  0xb4   :  { %536 = vmatpush.msrb.mxu2 %v497_v7 }
  0xb5   :  { %626 = vmatpush.msra.mxu1 %v465_v8  ;;  %v711_v4 = vand.u32 4294901760, %v710_v3 }
  0xb6   :  { %539 = vmatpush.msrb.mxu2 %v503_v12 }
  0xb7   :  { %628 = vmatpush.msra.mxu1 %v467_v13 }
  0xb8   :  { %542 = vmatpush.msrb.mxu2 %v509_v17 }
  0xb9   :  { %406 = vmatmul.f32.vlgmr.msra.gmra.mxu2 %v270_v59  ;;  %v693_v59 = vand.u32 4294901760, %v692_v55 }
  0xba   :  { %661 = vmatpush.msra.mxu2 %v660_v46 }
  0xbb   :  { %694 = vmatpush.msra.mxu3 %v693_v59 }
  0xbc   :  { %663 = vmatpush.msra.mxu2 %v662_v49 }
  0xbd   :  { %700 = vmatpush.msra.mxu3 %v699_v63 }
  0xbe   :  { %665 = vmatpush.msra.mxu2 %v664_v53 }
  0xbf   :  { %706 = vmatpush.msra.mxu3 %v705_v2 }
  0xc0   :  { %667 = vmatpush.msra.mxu2 %v666_v58 }
  0xc1   :  { %712 = vmatpush.msra.mxu3 %v711_v4 }
 0x128   :  { %v347_v29 = vpop.f32.mrf.mxu0 }
 0x12a   :  { %v374_v31 = vpop.f32.mrf.mxu1 }
 0x12c   :  { %v317_v25 = vpop.f32.mrf.mxu3 }
 0x134   :  { %v276_v26 = vpop.f32.mrf.mxu2  ;;  %v432_v35 = vpop.f32.mrf.mxu3 }
 0x135   :  { %v277_v27 = vadd.f32 %v859_v24, %v276_v26  ;;  %v861_v26 = vld [vmem:[%s1054_s8] ss:$0 sm:$0xff] }
 0x137   :  { %v318_v28 = vadd.f32 %v317_v25, %v277_v27 }
 0x139   :  { %v348_v30 = vadd.f32 %v347_v29, %v318_v28 }
 0x13b   :  { %v375_v32 = vadd.f32 %v374_v31, %v348_v30 }
 0x13c   :  { %v407_v33 = vpop.f32.mrf.mxu2 }
 0x13d   :  { %v408_v34 = vadd.f32 %v407_v33, %v375_v32 }
 0x13f   :  { %v433_v36 = vadd.f32 %v432_v35, %v408_v34 }
 0x141   :  { %vm435_vm3 = vcmp.gt.f32.partialorder %v433_v36, 0.0  ;;  %v436_v37 = vmul.f32 0.2, %v433_v36 }
 0x143   :  { %v437_v38 = vsel %vm435_vm3, %v433_v36, %v436_v37 }
 0x144   :  { %v447_v39 = vsel %vm246_vm2, %v437_v38, 0 }
 0x145   :  { %v469_v40 = vand.u32 4294901760, %v447_v39 }
 0x147   :  { %515 = vmatmul.f32.vlgmr.msrb.gmra.mxu1 %v469_v40  ;;  %v470_v41 = vsub.f32 %v447_v39, %v469_v40 }
 0x148   :  { %761 = vmatpush.msrb.mxu1 %v660_v46 }
 0x149   :  { %545 = vmatmul.f32.vlgmr.msrb.gmra.mxu2 %v470_v41  ;;  %v471_v42 = vand.u32 4294901760, %v470_v41 }
 0x14a   :  { %763 = vmatpush.msrb.mxu1 %v662_v49  ;;  %790 = vmatpush.msrb.mxu2 %v691_v51 }
 0x14b   :  { %572 = vmatmul.f32.vlgmr.msrb.gmra.mxu3 %v471_v42  ;;  %v472_v43 = vsub.f32 %v470_v41, %v471_v42 }
 0x14c   :  { %765 = vmatpush.msrb.mxu1 %v664_v53  ;;  %794 = vmatpush.msrb.mxu2 %v697_v56 }
 0x14d   :  { %v473_v44 = vand.u32 4294901760, %v472_v43  ;;  %821 = vmatpush.msrb.mxu3 %v660_v46 }
 0x14e   :  { %767 = vmatpush.msrb.mxu1 %v666_v58  ;;  %798 = vmatpush.msrb.mxu2 %v703_v61 }
 0x14f   :  { %474 = vmatmul.f32.vlgmr.msrb.gmra.mxu0 %v473_v44  ;;  %630 = vmatmul.f32.vlgmr.msra.gmra.mxu1 %v469_v40 }
 0x150   :  { %732 = vmatpush.msrb.mxu0 %v690_v48  ;;  %802 = vmatpush.msrb.mxu2 %v709_v1 }
 0x151   :  { %823 = vmatpush.msrb.mxu3 %v662_v49 }
 0x152   :  { %735 = vmatpush.msrb.mxu0 %v696_v52 }
 0x153   :  { %825 = vmatpush.msrb.mxu3 %v664_v53 }
 0x154   :  { %738 = vmatpush.msrb.mxu0 %v702_v57 }
 0x155   :  { %827 = vmatpush.msrb.mxu3 %v666_v58 }
 0x156   :  { %741 = vmatpush.msrb.mxu0 %v708_v62 }
 0x157   :  { %605 = vmatmul.f32.vlgmr.msra.gmra.mxu0 %v469_v40 }
 0x1c4   :  { %v516_v6 = vpop.f32.mrf.mxu1 }
 0x1cc   :  { %v475_v7 = vpop.f32.mrf.mxu0  ;;  %v546_v10 = vpop.f32.mrf.mxu2 }
 0x1cd   :  { %v476_v8 = vadd.f32 %v860_v5, %v475_v7  ;;  %v631_v16 = vpop.f32.mrf.mxu1 }
 0x1ce   :  { %v573_v12 = vpop.f32.mrf.mxu3 }
 0x1cf   :  { %v517_v9 = vadd.f32 %v516_v6, %v476_v8 }
 0x1d1   :  { %v547_v11 = vadd.f32 %v546_v10, %v517_v9 }
 0x1d3   :  { %v574_v13 = vadd.f32 %v573_v12, %v547_v11 }
 0x1d4   :  { %v606_v14 = vpop.f32.mrf.mxu0 }
 0x1d5   :  { %v607_v15 = vadd.f32 %v606_v14, %v574_v13 }
 0x1d7   :  { %v632_v17 = vadd.f32 %v631_v16, %v607_v15 }
 0x1d9   :  { %vm634_vm4 = vcmp.gt.f32.partialorder %v632_v17, 0.0  ;;  %v635_v18 = vmul.f32 0.2, %v632_v17 }
 0x1db   :  { %v636_v19 = vsel %vm634_vm4, %v632_v17, %v635_v18 }
 0x1dc   :  { %v646_v20 = vsel %vm246_vm2, %v636_v19, 0 }
 0x1dd   :  { %v668_v21 = vand.u32 4294901760, %v646_v20 }
 0x1df   :  { %714 = vmatmul.f32.vlgmr.msra.gmra.mxu3 %v668_v21  ;;  %v669_v22 = vsub.f32 %v646_v20, %v668_v21 }
 0x1e1   :  { %744 = vmatmul.f32.vlgmr.msrb.gmra.mxu0 %v669_v22  ;;  %v670_v23 = vand.u32 4294901760, %v669_v22 }
 0x1e3   :  { %771 = vmatmul.f32.vlgmr.msrb.gmra.mxu1 %v670_v23  ;;  %v671_v24 = vsub.f32 %v669_v22, %v670_v23 }
 0x1e5   :  { %v672_v25 = vand.u32 4294901760, %v671_v24 }
 0x1e7   :  { %673 = vmatmul.f32.vlgmr.msra.gmra.mxu2 %v672_v25  ;;  %829 = vmatmul.f32.vlgmr.msrb.gmra.mxu3 %v668_v21 }
 0x1ef   :  { %804 = vmatmul.f32.vlgmr.msrb.gmra.mxu2 %v668_v21 }
 0x25e   :  { %v745_v31 = vpop.f32.mrf.mxu0 }
 0x260   :  { %v772_v33 = vpop.f32.mrf.mxu1 }
 0x262   :  { %v715_v27 = vpop.f32.mrf.mxu3 }
 0x26a   :  { %v674_v28 = vpop.f32.mrf.mxu2  ;;  %v830_v37 = vpop.f32.mrf.mxu3 }
 0x26b   :  { %v675_v29 = vadd.f32 %v861_v26, %v674_v28 }
 0x26d   :  { %v716_v30 = vadd.f32 %v715_v27, %v675_v29 }
 0x26f   :  { %v746_v32 = vadd.f32 %v745_v31, %v716_v30 }
 0x271   :  { %v773_v34 = vadd.f32 %v772_v33, %v746_v32 }
 0x272   :  { %v805_v35 = vpop.f32.mrf.mxu2 }
 0x273   :  { %v806_v36 = vadd.f32 %v805_v35, %v773_v34 }
 0x275   :  { %v831_v38 = vadd.f32 %v830_v37, %v806_v36 }
 0x277   :  { %834 = vst.msk [vmem:[#allocation7] sm:$0xff] %vm833_vm5, %v831_v38 }
 0x278   :  { %845 = dma.vmem_to_hbm [thread:$0]  %s841_s19, 128, %s843_s21, [#allocation4]  }
 0x279   :  { %938 = dma.done.wait [#allocation4], 128  }
 0x27a   :  { %939 = vsyncadd [#allocation4], 4294967168 }
 0x27b   :  { %850 = vsyncpa [#allocation3], 1 }
 0x27c   :  { %851 = vsyncpa [#allocation6], 1 }
 0x27d   :  { %852 = vsyncpa [#allocation4], 1 }

// kernel: tpu_custom_call.1
= control target key start
LH: loop header
LB: loop body
LE: loop exit
PB: predicated region body
PF: predicated region fallthrough
CT: control target
= control target key end

     0   :  { %14 = vsyncpa [#allocation3], 0  ;;  %s1046_s0 = inlined_call_operand.vmem [shape: f32[8,16], index: 0, kind: input, shape index: {}]   ;;  %s1047_s1 = inlined_call_operand.hbm [shape: f32[16,32], index: 1, kind: input, shape index: {}]   ;;  %s1048_s2 = inlined_call_operand.vmem [shape: f32[1,32], index: 2, kind: input, shape index: {}]   ;;  %s1049_s3 = inlined_call_operand.vmem [shape: f32[32,32], index: 3, kind: input, shape index: {}]   ;;  %s1050_s4 = inlined_call_operand.vmem [shape: f32[1,32], index: 4, kind: input, shape index: {}]   ;;  %s1051_s5 = inlined_call_operand.hbm [shape: f32[32,32], index: 5, kind: input, shape index: {}]   ;;  %s1052_s6 = inlined_call_operand.vmem [shape: f32[1,32], index: 6, kind: input, shape index: {}]   ;;  %s1053_s7 = inlined_call_operand.vmem [shape: f32[32,8], index: 7, kind: input, shape index: {}]   ;;  %s1054_s8 = inlined_call_operand.vmem [shape: f32[1,8], index: 8, kind: input, shape index: {}]   ;;  %s1055_s9 = inlined_call_operand.hbm [shape: f32[8,8], index: 9, kind: output, shape index: {}]  }
   0x1   :  { %15 = vsyncpa [#allocation6], 0 }
   0x2   :  { %16 = vsyncpa [#allocation4], 0  ;;  %s23_s11 = sshll.u32 %s1047_s1, 4  ;;  %s940_s12 = smov [#allocation2]   ;;  %s24_s11 = int_to_ptr.hbm [resolvable:$true] %s23_s11 }
   0x3   :  { %s25_s13 = sshll.u32 %s940_s12, 4  ;;  %s42_s16 = sshll.u32 %s1051_s5, 4  ;;  %s26_s13 = int_to_ptr.vmem [resolvable:$true] %s25_s13  ;;  %s43_s16 = int_to_ptr.hbm [resolvable:$true] %s42_s16 }
   0x4   :  { %s941_s17 = smov 128   ;;  %s942_s18 = smov 8  }
   0x5   :  { %31 = dma.hbm_to_vmem [thread:$0]  %s24_s11, 256, %s26_s13, [#allocation3], %s941_s17, %s941_s17, %s942_s18  }
   0x6   :  { %s943_s19 = smov [#allocation5]  }
   0x7   :  { %s44_s20 = sshll.u32 %s943_s19, 4  ;;  %s45_s20 = int_to_ptr.vmem [resolvable:$true] %s44_s20 }
   0x8   :  { %50 = dma.hbm_to_vmem [thread:$0]  %s43_s16, 512, %s45_s20, [#allocation6], %s941_s17, %s941_s17, %s942_s18  }
   0x9   :  { %934 = dma.done.wait [#allocation3], 256  }
   0xa   :  { %935 = vsyncadd [#allocation3], 4294967040 }
   0xb   :  { %936 = dma.done.wait [#allocation6], 512  }
   0xc   :  { %937 = vsyncadd [#allocation6], 4294966784  ;;  %vm72_vm0 = vcmask 130048   ;;  %v67_v0 = vld [vmem:[#allocation2 + $0x8] sm:$0xff]  ;;  %v66_v1 = vld [vmem:[#allocation2] sm:$0xff]  ;;  %vm246_vm2 = vcmask 261120  }
   0xd   :  { %v65_v2 = vld [vmem:[%s1046_s0] sm:$0xff]  ;;  %v90_v3 = vand.u32 4294901760, %v67_v0  ;;  %v92_v4 = vand.u32 4294901760, %v66_v1  ;;  %v241_v19 = vld [vmem:[%s1049_s3 + $0x18] sm:$0xff]  ;;  %v240_v21 = vld [vmem:[%s1049_s3 + $0x10] sm:$0xff]  ;;  %s944_s18 = smov [#allocation7]  }
   0xe   :  { %v74_v5 = vsel %vm72_vm0, %v65_v2, 0  ;;  %v262_v20 = vand.u32 4294901760, %v241_v19  ;;  %v264_v23 = vand.u32 4294901760, %v240_v21  ;;  %v239_v24 = vld [vmem:[%s1049_s3 + $0x8] sm:$0xff]  ;;  %v238_v28 = vld [vmem:[%s1049_s3] sm:$0xff]  ;;  %s840_s19 = sshll.u32 %s944_s18, 4  ;;  %s841_s19 = int_to_ptr.vmem [resolvable:$true] %s840_s19 }
   0xf   :  { %v94_v6 = vand.u32 4294901760, %v74_v5  ;;  %v118_v7 = vsub.f32 %v67_v0, %v90_v3  ;;  %91 = vmatpush.msra.mxu0 %v90_v3  ;;  %v124_v8 = vsub.f32 %v66_v1, %v92_v4  ;;  %175 = vmatpush.msra.mxu3 %v90_v3  ;;  %v266_v27 = vand.u32 4294901760, %v239_v24  ;;  %v858_v43 = vld [vmem:[%s1048_s2] ss:$0 sm:$0xff]  ;;  %v441_v0 = vld [vmem:[#allocation5 + $0x18] sm:$0xff]  ;;  %s842_s21 = sshll.u32 %s1055_s9, 4  ;;  %s843_s21 = int_to_ptr.hbm [resolvable:$true] %s842_s21 }
  0x10   :  { %v292_v22 = vsub.f32 %v241_v19, %v262_v20  ;;  %v298_v26 = vsub.f32 %v240_v21, %v264_v23  ;;  %v268_v32 = vand.u32 4294901760, %v238_v28  ;;  %v461_v1 = vand.u32 4294901760, %v441_v0  ;;  %v440_v2 = vld [vmem:[#allocation5 + $0x10] sm:$0xff] }
  0x11   :  { %v95_v9 = vsub.f32 %v74_v5, %v94_v6  ;;  %150 = vmatpush.msra.mxu2 %v118_v7  ;;  %93 = vmatpush.msra.mxu0 %v92_v4  ;;  %v119_v10 = vand.u32 4294901760, %v118_v7  ;;  %v125_v11 = vand.u32 4294901760, %v124_v8  ;;  %v304_v31 = vsub.f32 %v239_v24, %v266_v27  ;;  %v439_v5 = vld [vmem:[#allocation5 + $0x8] sm:$0xff]  ;;  %v859_v24 = vld [vmem:[%s1050_s4] ss:$0 sm:$0xff] }
  0x12   :  { %177 = vmatpush.msra.mxu3 %v92_v4  ;;  %v293_v25 = vand.u32 4294901760, %v292_v22  ;;  %v299_v30 = vand.u32 4294901760, %v298_v26  ;;  %v310_v36 = vsub.f32 %v238_v28, %v268_v32  ;;  %vm833_vm5 = vcmask 64512  }
  0x13   :  { %v96_v12 = vand.u32 4294901760, %v95_v9  ;;  %153 = vmatpush.msra.mxu2 %v124_v8  ;;  %v120_v13 = vsub.f32 %v118_v7, %v119_v10  ;;  %202 = vmatpush.msrb.mxu0 %v119_v10  ;;  %v126_v14 = vsub.f32 %v124_v8, %v125_v11  ;;  %v305_v35 = vand.u32 4294901760, %v304_v31 }
  0x14   :  { %156 = vmatmul.f32.vlgmr.msra.gmra.mxu2 %v95_v9  ;;  %v294_v29 = vsub.f32 %v292_v22, %v293_v25  ;;  %v300_v34 = vsub.f32 %v298_v26, %v299_v30  ;;  %v311_v39 = vand.u32 4294901760, %v310_v36  ;;  %v465_v8 = vand.u32 4294901760, %v439_v5 }
  0x15   :  { %v97_v15 = vsub.f32 %v95_v9, %v96_v12  ;;  %181 = vmatmul.f32.vlgmr.msra.gmra.mxu3 %v96_v12  ;;  %v121_v16 = vand.u32 4294901760, %v120_v13  ;;  %v127_v17 = vand.u32 4294901760, %v126_v14  ;;  %206 = vmatpush.msrb.mxu0 %v125_v11  ;;  %v306_v38 = vsub.f32 %v304_v31, %v305_v35  ;;  %v438_v9 = vld [vmem:[#allocation5] sm:$0xff] }
  0x16   :  { %263 = vmatpush.msrb.mxu2 %v262_v20  ;;  %v295_v33 = vand.u32 4294901760, %v294_v29  ;;  %v301_v37 = vand.u32 4294901760, %v300_v34  ;;  %v312_v41 = vsub.f32 %v310_v36, %v311_v39  ;;  %v503_v12 = vsub.f32 %v439_v5, %v465_v8  ;;  %v860_v5 = vld [vmem:[%s1052_s6] ss:$0 sm:$0xff] }
  0x17   :  { %v98_v18 = vand.u32 4294901760, %v97_v15  ;;  %122 = vmatpush.msra.mxu1 %v121_v16  ;;  %v307_v40 = vand.u32 4294901760, %v306_v38  ;;  %v467_v13 = vand.u32 4294901760, %v438_v9 }
  0x18   :  { %265 = vmatpush.msrb.mxu2 %v264_v23  ;;  %296 = vmatpush.msrb.mxu3 %v295_v33  ;;  %v313_v42 = vand.u32 4294901760, %v312_v41  ;;  %v504_v16 = vand.u32 4294901760, %v503_v12 }
  0x19   :  { %99 = vmatmul.f32.vlgmr.msra.gmra.mxu0 %v98_v18  ;;  %128 = vmatpush.msra.mxu1 %v127_v17  ;;  %v509_v17 = vsub.f32 %v438_v9, %v467_v13 }
  0x1a   :  { %130 = vmatmul.f32.vlgmr.msra.gmra.mxu1 %v94_v6  ;;  %334 = vmatpush.msra.mxu0 %v292_v22  ;;  %v505_v19 = vsub.f32 %v503_v12, %v504_v16 }
  0x1b   :  { %227 = vmatpush.msrb.mxu1 %v90_v3  ;;  %267 = vmatpush.msrb.mxu2 %v266_v27  ;;  %v491_v3 = vsub.f32 %v441_v0, %v461_v1 }
  0x1c   :  { %337 = vmatpush.msra.mxu0 %v298_v26  ;;  %302 = vmatpush.msrb.mxu3 %v301_v37  ;;  %v506_v21 = vand.u32 4294901760, %v505_v19 }
  0x1d   :  { %229 = vmatpush.msrb.mxu1 %v92_v4  ;;  %269 = vmatpush.msrb.mxu2 %v268_v32  ;;  %v463_v4 = vand.u32 4294901760, %v440_v2 }
  0x1e   :  { %340 = vmatpush.msra.mxu0 %v304_v31  ;;  %308 = vmatpush.msrb.mxu3 %v307_v40 }
  0x1f   :  { %363 = vmatpush.msra.mxu1 %v262_v20  ;;  %392 = vmatpush.msra.mxu2 %v293_v25  ;;  %v497_v7 = vsub.f32 %v440_v2, %v463_v4 }
  0x20   :  { %343 = vmatpush.msra.mxu0 %v310_v36  ;;  %314 = vmatpush.msrb.mxu3 %v313_v42 }
  0x21   :  { %208 = vmatmul.f32.vlgmr.msrb.gmra.mxu0 %v94_v6  ;;  %365 = vmatpush.msra.mxu1 %v264_v23  ;;  %v498_v11 = vand.u32 4294901760, %v497_v7 }
  0x22   :  { %231 = vmatmul.f32.vlgmr.msrb.gmra.mxu1 %v94_v6  ;;  %396 = vmatpush.msra.mxu2 %v299_v30  ;;  %v492_v6 = vand.u32 4294901760, %v491_v3 }
  0x23   :  { %367 = vmatpush.msra.mxu1 %v266_v27  ;;  %423 = vmatpush.msra.mxu3 %v262_v20  ;;  %v499_v15 = vsub.f32 %v497_v7, %v498_v11  ;;  %v510_v20 = vand.u32 4294901760, %v509_v17 }
  0x24   :  { %400 = vmatpush.msra.mxu2 %v305_v35  ;;  %462 = vmatpush.msrb.mxu0 %v461_v1  ;;  %v493_v10 = vsub.f32 %v491_v3, %v492_v6 }
  0x25   :  { %369 = vmatpush.msra.mxu1 %v268_v32  ;;  %425 = vmatpush.msra.mxu3 %v264_v23  ;;  %v500_v18 = vand.u32 4294901760, %v499_v15  ;;  %v511_v22 = vsub.f32 %v509_v17, %v510_v20 }
  0x26   :  { %404 = vmatpush.msra.mxu2 %v311_v39  ;;  %464 = vmatpush.msrb.mxu0 %v463_v4  ;;  %v494_v14 = vand.u32 4294901760, %v493_v10 }
  0x27   :  { %427 = vmatpush.msra.mxu3 %v266_v27  ;;  %v512_v23 = vand.u32 4294901760, %v511_v22 }
  0x28   :  { %466 = vmatpush.msrb.mxu0 %v465_v8  ;;  %495 = vmatpush.msrb.mxu1 %v494_v14 }
  0x29   :  { %429 = vmatpush.msra.mxu3 %v268_v32 }
  0x2a   :  { %468 = vmatpush.msrb.mxu0 %v467_v13  ;;  %501 = vmatpush.msrb.mxu1 %v500_v18 }
  0x2c   :  { %507 = vmatpush.msrb.mxu1 %v506_v21 }
  0x2e   :  { %513 = vmatpush.msrb.mxu1 %v512_v23 }
  0x96   :  { %v100_v44 = vpop.f32.mrf.mxu0 }
  0x97   :  { %v101_v45 = vadd.f32 %v858_v43, %v100_v44  ;;  %v131_v46 = vpop.f32.mrf.mxu1  ;;  %v157_v47 = vpop.f32.mrf.mxu2 }
  0x98   :  { %v182_v49 = vpop.f32.mrf.mxu3 }
  0x99   :  { %v132_v48 = vadd.f32 %v131_v46, %v101_v45  ;;  %v640_v45 = vld [vmem:[%s1053_s7 + $0x18] sm:$0xff] }
  0x9a   :  { %v660_v46 = vand.u32 4294901760, %v640_v45 }
  0x9b   :  { %v158_v50 = vadd.f32 %v157_v47, %v132_v48  ;;  %v639_v47 = vld [vmem:[%s1053_s7 + $0x10] sm:$0xff] }
  0x9c   :  { %v690_v48 = vsub.f32 %v640_v45, %v660_v46 }
  0x9d   :  { %v183_v51 = vadd.f32 %v182_v49, %v158_v50  ;;  %v662_v49 = vand.u32 4294901760, %v639_v47  ;;  %v638_v50 = vld [vmem:[%s1053_s7 + $0x8] sm:$0xff] }
  0x9e   :  { %v209_v52 = vpop.f32.mrf.mxu0 }
  0x9f   :  { %v210_v53 = vadd.f32 %v209_v52, %v183_v51  ;;  %v232_v54 = vpop.f32.mrf.mxu1  ;;  %v691_v51 = vand.u32 4294901760, %v690_v48  ;;  %v696_v52 = vsub.f32 %v639_v47, %v662_v49 }
  0xa1   :  { %v233_v55 = vadd.f32 %v232_v54, %v210_v53  ;;  %v664_v53 = vand.u32 4294901760, %v638_v50  ;;  %v637_v54 = vld [vmem:[%s1053_s7] sm:$0xff] }
  0xa3   :  { %vm235_vm1 = vcmp.gt.f32.partialorder %v233_v55, 0.0  ;;  %v236_v56 = vmul.f32 0.2, %v233_v55 }
  0xa5   :  { %v237_v57 = vsel %vm235_vm1, %v233_v55, %v236_v56  ;;  %v692_v55 = vsub.f32 %v690_v48, %v691_v51  ;;  %v697_v56 = vand.u32 4294901760, %v696_v52 }
  0xa6   :  { %v248_v58 = vsel %vm246_vm2, %v237_v57, 0  ;;  %v702_v57 = vsub.f32 %v638_v50, %v664_v53 }
  0xa7   :  { %v270_v59 = vand.u32 4294901760, %v248_v58 }
  0xa9   :  { %v271_v60 = vsub.f32 %v248_v58, %v270_v59  ;;  %316 = vmatmul.f32.vlgmr.msrb.gmra.mxu3 %v270_v59  ;;  %v666_v58 = vand.u32 4294901760, %v637_v54 }
  0xaa   :  { %562 = vmatpush.msrb.mxu3 %v461_v1 }
  0xab   :  { %346 = vmatmul.f32.vlgmr.msra.gmra.mxu0 %v271_v60  ;;  %v272_v61 = vand.u32 4294901760, %v271_v60 }
  0xac   :  { %564 = vmatpush.msrb.mxu3 %v463_v4  ;;  %591 = vmatpush.msra.mxu0 %v492_v6 }
  0xad   :  { %373 = vmatmul.f32.vlgmr.msra.gmra.mxu1 %v272_v61  ;;  %v273_v62 = vsub.f32 %v271_v60, %v272_v61  ;;  %v698_v60 = vsub.f32 %v696_v52, %v697_v56  ;;  %v703_v61 = vand.u32 4294901760, %v702_v57 }
  0xae   :  { %566 = vmatpush.msrb.mxu3 %v465_v8  ;;  %595 = vmatpush.msra.mxu0 %v498_v11 }
  0xaf   :  { %v274_v63 = vand.u32 4294901760, %v273_v62  ;;  %622 = vmatpush.msra.mxu1 %v461_v1  ;;  %v708_v62 = vsub.f32 %v637_v54, %v666_v58  ;;  %v704_v0 = vsub.f32 %v702_v57, %v703_v61 }
  0xb0   :  { %568 = vmatpush.msrb.mxu3 %v467_v13  ;;  %599 = vmatpush.msra.mxu0 %v504_v16 }
  0xb1   :  { %275 = vmatmul.f32.vlgmr.msrb.gmra.mxu2 %v274_v63  ;;  %431 = vmatmul.f32.vlgmr.msra.gmra.mxu3 %v270_v59  ;;  %v699_v63 = vand.u32 4294901760, %v698_v60  ;;  %v709_v1 = vand.u32 4294901760, %v708_v62  ;;  %v705_v2 = vand.u32 4294901760, %v704_v0 }
  0xb2   :  { %533 = vmatpush.msrb.mxu2 %v491_v3  ;;  %603 = vmatpush.msra.mxu0 %v510_v20 }
  0xb3   :  { %624 = vmatpush.msra.mxu1 %v463_v4  ;;  %v710_v3 = vsub.f32 %v708_v62, %v709_v1 }
  0xb4   :  { %536 = vmatpush.msrb.mxu2 %v497_v7 }
  0xb5   :  { %626 = vmatpush.msra.mxu1 %v465_v8  ;;  %v711_v4 = vand.u32 4294901760, %v710_v3 }
  0xb6   :  { %539 = vmatpush.msrb.mxu2 %v503_v12 }
  0xb7   :  { %628 = vmatpush.msra.mxu1 %v467_v13 }
  0xb8   :  { %542 = vmatpush.msrb.mxu2 %v509_v17 }
  0xb9   :  { %406 = vmatmul.f32.vlgmr.msra.gmra.mxu2 %v270_v59  ;;  %v693_v59 = vand.u32 4294901760, %v692_v55 }
  0xba   :  { %661 = vmatpush.msra.mxu2 %v660_v46 }
  0xbb   :  { %694 = vmatpush.msra.mxu3 %v693_v59 }
  0xbc   :  { %663 = vmatpush.msra.mxu2 %v662_v49 }
  0xbd   :  { %700 = vmatpush.msra.mxu3 %v699_v63 }
  0xbe   :  { %665 = vmatpush.msra.mxu2 %v664_v53 }
  0xbf   :  { %706 = vmatpush.msra.mxu3 %v705_v2 }
  0xc0   :  { %667 = vmatpush.msra.mxu2 %v666_v58 }
  0xc1   :  { %712 = vmatpush.msra.mxu3 %v711_v4 }
 0x128   :  { %v347_v29 = vpop.f32.mrf.mxu0 }
 0x12a   :  { %v374_v31 = vpop.f32.mrf.mxu1 }
 0x12c   :  { %v317_v25 = vpop.f32.mrf.mxu3 }
 0x134   :  { %v276_v26 = vpop.f32.mrf.mxu2  ;;  %v432_v35 = vpop.f32.mrf.mxu3 }
 0x135   :  { %v277_v27 = vadd.f32 %v859_v24, %v276_v26  ;;  %v861_v26 = vld [vmem:[%s1054_s8] ss:$0 sm:$0xff] }
 0x137   :  { %v318_v28 = vadd.f32 %v317_v25, %v277_v27 }
 0x139   :  { %v348_v30 = vadd.f32 %v347_v29, %v318_v28 }
 0x13b   :  { %v375_v32 = vadd.f32 %v374_v31, %v348_v30 }
 0x13c   :  { %v407_v33 = vpop.f32.mrf.mxu2 }
 0x13d   :  { %v408_v34 = vadd.f32 %v407_v33, %v375_v32 }
 0x13f   :  { %v433_v36 = vadd.f32 %v432_v35, %v408_v34 }
 0x141   :  { %vm435_vm3 = vcmp.gt.f32.partialorder %v433_v36, 0.0  ;;  %v436_v37 = vmul.f32 0.2, %v433_v36 }
 0x143   :  { %v437_v38 = vsel %vm435_vm3, %v433_v36, %v436_v37 }
 0x144   :  { %v447_v39 = vsel %vm246_vm2, %v437_v38, 0 }
 0x145   :  { %v469_v40 = vand.u32 4294901760, %v447_v39 }
 0x147   :  { %515 = vmatmul.f32.vlgmr.msrb.gmra.mxu1 %v469_v40  ;;  %v470_v41 = vsub.f32 %v447_v39, %v469_v40 }
 0x148   :  { %761 = vmatpush.msrb.mxu1 %v660_v46 }
 0x149   :  { %545 = vmatmul.f32.vlgmr.msrb.gmra.mxu2 %v470_v41  ;;  %v471_v42 = vand.u32 4294901760, %v470_v41 }
 0x14a   :  { %763 = vmatpush.msrb.mxu1 %v662_v49  ;;  %790 = vmatpush.msrb.mxu2 %v691_v51 }
 0x14b   :  { %572 = vmatmul.f32.vlgmr.msrb.gmra.mxu3 %v471_v42  ;;  %v472_v43 = vsub.f32 %v470_v41, %v471_v42 }
 0x14c   :  { %765 = vmatpush.msrb.mxu1 %v664_v53  ;;  %794 = vmatpush.msrb.mxu2 %v697_v56 }
 0x14d   :  { %v473_v44 = vand.u32 4294901760, %v472_v43  ;;  %821 = vmatpush.msrb.mxu3 %v660_v46 }
 0x14e   :  { %767 = vmatpush.msrb.mxu1 %v666_v58  ;;  %798 = vmatpush.msrb.mxu2 %v703_v61 }
 0x14f   :  { %474 = vmatmul.f32.vlgmr.msrb.gmra.mxu0 %v473_v44  ;;  %630 = vmatmul.f32.vlgmr.msra.gmra.mxu1 %v469_v40 }
 0x150   :  { %732 = vmatpush.msrb.mxu0 %v690_v48  ;;  %802 = vmatpush.msrb.mxu2 %v709_v1 }
 0x151   :  { %823 = vmatpush.msrb.mxu3 %v662_v49 }
 0x152   :  { %735 = vmatpush.msrb.mxu0 %v696_v52 }
 0x153   :  { %825 = vmatpush.msrb.mxu3 %v664_v53 }
 0x154   :  { %738 = vmatpush.msrb.mxu0 %v702_v57 }
 0x155   :  { %827 = vmatpush.msrb.mxu3 %v666_v58 }
 0x156   :  { %741 = vmatpush.msrb.mxu0 %v708_v62 }
 0x157   :  { %605 = vmatmul.f32.vlgmr.msra.gmra.mxu0 %v469_v40 }
 0x1c4   :  { %v516_v6 = vpop.f32.mrf.mxu1 }
 0x1cc   :  { %v475_v7 = vpop.f32.mrf.mxu0  ;;  %v546_v10 = vpop.f32.mrf.mxu2 }
 0x1cd   :  { %v476_v8 = vadd.f32 %v860_v5, %v475_v7  ;;  %v631_v16 = vpop.f32.mrf.mxu1 }
 0x1ce   :  { %v573_v12 = vpop.f32.mrf.mxu3 }
 0x1cf   :  { %v517_v9 = vadd.f32 %v516_v6, %v476_v8 }
 0x1d1   :  { %v547_v11 = vadd.f32 %v546_v10, %v517_v9 }
 0x1d3   :  { %v574_v13 = vadd.f32 %v573_v12, %v547_v11 }
 0x1d4   :  { %v606_v14 = vpop.f32.mrf.mxu0 }
 0x1d5   :  { %v607_v15 = vadd.f32 %v606_v14, %v574_v13 }
 0x1d7   :  { %v632_v17 = vadd.f32 %v631_v16, %v607_v15 }
 0x1d9   :  { %vm634_vm4 = vcmp.gt.f32.partialorder %v632_v17, 0.0  ;;  %v635_v18 = vmul.f32 0.2, %v632_v17 }
 0x1db   :  { %v636_v19 = vsel %vm634_vm4, %v632_v17, %v635_v18 }
 0x1dc   :  { %v646_v20 = vsel %vm246_vm2, %v636_v19, 0 }
 0x1dd   :  { %v668_v21 = vand.u32 4294901760, %v646_v20 }
 0x1df   :  { %714 = vmatmul.f32.vlgmr.msra.gmra.mxu3 %v668_v21  ;;  %v669_v22 = vsub.f32 %v646_v20, %v668_v21 }
 0x1e1   :  { %744 = vmatmul.f32.vlgmr.msrb.gmra.mxu0 %v669_v22  ;;  %v670_v23 = vand.u32 4294901760, %v669_v22 }
 0x1e3   :  { %771 = vmatmul.f32.vlgmr.msrb.gmra.mxu1 %v670_v23  ;;  %v671_v24 = vsub.f32 %v669_v22, %v670_v23 }
 0x1e5   :  { %v672_v25 = vand.u32 4294901760, %v671_v24 }
 0x1e7   :  { %673 = vmatmul.f32.vlgmr.msra.gmra.mxu2 %v672_v25  ;;  %829 = vmatmul.f32.vlgmr.msrb.gmra.mxu3 %v668_v21 }
 0x1ef   :  { %804 = vmatmul.f32.vlgmr.msrb.gmra.mxu2 %v668_v21 }
 0x25e   :  { %v745_v31 = vpop.f32.mrf.mxu0 }
 0x260   :  { %v772_v33 = vpop.f32.mrf.mxu1 }
 0x262   :  { %v715_v27 = vpop.f32.mrf.mxu3 }
 0x26a   :  { %v674_v28 = vpop.f32.mrf.mxu2  ;;  %v830_v37 = vpop.f32.mrf.mxu3 }
 0x26b   :  { %v675_v29 = vadd.f32 %v861_v26, %v674_v28 }
 0x26d   :  { %v716_v30 = vadd.f32 %v715_v27, %v675_v29 }
 0x26f   :  { %v746_v32 = vadd.f32 %v745_v31, %v716_v30 }
 0x271   :  { %v773_v34 = vadd.f32 %v772_v33, %v746_v32 }
 0x272   :  { %v805_v35 = vpop.f32.mrf.mxu2 }
 0x273   :  { %v806_v36 = vadd.f32 %v805_v35, %v773_v34 }
 0x275   :  { %v831_v38 = vadd.f32 %v830_v37, %v806_v36 }
 0x277   :  { %834 = vst.msk [vmem:[#allocation7] sm:$0xff] %vm833_vm5, %v831_v38 }
 0x278   :  { %845 = dma.vmem_to_hbm [thread:$0]  %s841_s19, 128, %s843_s21, [#allocation4]  }
 0x279   :  { %938 = dma.done.wait [#allocation4], 128  }
 0x27a   :  { %939 = vsyncadd [#allocation4], 4294967168 }
 0x27b   :  { %850 = vsyncpa [#allocation3], 1 }
 0x27c   :  { %851 = vsyncpa [#allocation6], 1 }
 0x27d   :  { %852 = vsyncpa [#allocation4], 1 }

</bundles_post_ra>
